<compile_context>
chip_gen: v6e
topology: v6e:2x2x1
jax: 0.10.0
libtpu: 0.0.40
codegen_flags: <defaults>
</compile_context>

<pallas_src>
import functools

import jax
import jax.numpy as jnp
from jax.experimental import pallas as pl
from jax.experimental.pallas import tpu as pltpu

EPS = 1e-5


def _encoder_layer_kernel(
    x_ref,                 # (S, D)  one batch element (leading batch dim squeezed by BlockSpec)
    g1_ref, be1_ref,       # (1, D)  LayerNorm1 weight / bias (f32)
    wqkv_ref, bqkv_ref,    # (D, 3D) bf16 fused in-proj (x @ W), (1, 3D) f32 bias
    wo_ref, bo_ref,        # (D, D)  bf16 out-proj, (1, D) f32 bias
    g2_ref, be2_ref,       # (1, D)  LayerNorm2 weight / bias (f32)
    w1_ref, b1_ref,        # (D, F)  bf16, (1, F) f32
    w2_ref, b2_ref,        # (F, D)  bf16, (1, D) f32
    o_ref,                 # (S, D)
    *, nhead,
):
    S, D = x_ref.shape
    hd = D // nhead
    scale = 1.0 / float(hd) ** 0.5

    x = x_ref[...].astype(jnp.float32)

    # ---- LayerNorm 1 (f32, VPU) ----
    mu = jnp.mean(x, axis=-1, keepdims=True)
    var = jnp.mean((x - mu) ** 2, axis=-1, keepdims=True)
    xn = (x - mu) * jax.lax.rsqrt(var + EPS) * g1_ref[0] + be1_ref[0]

    # ---- fused QKV projection: bf16 operands, f32 MXU accumulation ----
    qkv = jnp.dot(xn.astype(jnp.bfloat16), wqkv_ref[...],
                  preferred_element_type=jnp.float32) + bqkv_ref[0]            # (S, 3D)
    q = (qkv[:, :D] * scale).astype(jnp.bfloat16)      # scale q once, not per head
    k = qkv[:, D:2 * D].astype(jnp.bfloat16)
    v = qkv[:, 2 * D:].astype(jnp.bfloat16)

    # ---- multi-head self-attention ----
    # This kernel instance only sees one batch element, so attention is block-diagonal
    # by construction and no additive mask is needed.  nhead is tiny and static, so the
    # Python loop unrolls to 4 independent (S, S) softmax blocks; per-head contexts are
    # assembled along the lane dim for ONE D-contraction out-projection below.
    ctx_parts = []
    for h in range(nhead):                                                     # static unrolled loop
        lo, hi = h * hd, (h + 1) * hd
        s = jax.lax.dot_general(                     # q_h @ k_h^T without a materialized .T
            q[:, lo:hi], k[:, lo:hi],
            dimension_numbers=(((1,), (1,)), ((), ())),
            preferred_element_type=jnp.float32)                                # (S, S)
        s = s - jnp.max(s, axis=-1, keepdims=True)
        p = jnp.exp(s)
        p = p * pl.reciprocal(jnp.sum(p, axis=-1, keepdims=True), approx=True)
        ctx_parts.append(jnp.dot(p.astype(jnp.bfloat16), v[:, lo:hi],
                                 preferred_element_type=jnp.float32))          # (S, hd)
    ctx = jnp.concatenate(ctx_parts, axis=-1).astype(jnp.bfloat16)             # (S, D)
    attn = jnp.dot(ctx, wo_ref[...], preferred_element_type=jnp.float32) + bo_ref[0]

    # ---- residual 1: attention output added to the *normalized* src ----
    x1 = xn + attn

    # ---- LayerNorm 2 (f32) ----
    mu2 = jnp.mean(x1, axis=-1, keepdims=True)
    var2 = jnp.mean((x1 - mu2) ** 2, axis=-1, keepdims=True)
    yn = (x1 - mu2) * jax.lax.rsqrt(var2 + EPS) * g2_ref[0] + be2_ref[0]

    # ---- feed-forward (bf16 matmuls, f32 accumulation) ----
    h1 = jnp.dot(yn.astype(jnp.bfloat16), w1_ref[...],
                 preferred_element_type=jnp.float32) + b1_ref[0]
    h1 = jnp.maximum(h1, 0.0)
    ff = jnp.dot(h1.astype(jnp.bfloat16), w2_ref[...],
                 preferred_element_type=jnp.float32) + b2_ref[0]

    # ---- residual 2: the module reassigns src = norm2(src) before the FFN, so the
    #      second residual is taken from the LN2 output (not from x1) ----
    o_ref[...] = (yn + ff).astype(o_ref.dtype)


def transformer_encoder_layer_prenorm(src, params, *, nhead):
    """src: (seq_len, batch, d_model) float32 — nn.MultiheadAttention's default layout.

    Returns the same shape/dtype.  The wrapper goes batch-major once so the grid can
    process one batch element per step (block-diagonal attention, no mask); feed
    batch-major activations directly at production to drop the transpose.
    """
    S, B, D = src.shape
    xb = jnp.transpose(src, (1, 0, 2))          # (B, S, D)

    def full(shape):
        # Whole-array block with a constant index_map: DMA'd to VMEM once, never
        # re-fetched across the batch grid.
        return pl.BlockSpec(shape, lambda b: (0,) * len(shape))

    p = params
    kernel = functools.partial(_encoder_layer_kernel, nhead=nhead)
    out = pl.pallas_call(
        kernel,
        out_shape=jax.ShapeDtypeStruct((B, S, D), src.dtype),
        grid=(B,),
        in_specs=[
            pl.BlockSpec((None, S, D), lambda b: (b, 0, 0)),      # x: one batch element
            full(p["g1"].shape), full(p["be1"].shape),
            full(p["wqkv_t"].shape), full(p["bqkv"].shape),
            full(p["wo_t"].shape), full(p["bo"].shape),
            full(p["g2"].shape), full(p["be2"].shape),
            full(p["w1_t"].shape), full(p["b1"].shape),
            full(p["w2_t"].shape), full(p["b2"].shape),
        ],
        out_specs=pl.BlockSpec((None, S, D), lambda b: (b, 0, 0)),
        compiler_params=pltpu.CompilerParams(
            dimension_semantics=("parallel",),                    # batch axis -> both v7x TCs
            vmem_limit_bytes=48 * 1024 * 1024,                    # headroom under v7x's 64 MiB
        ),
    )(
        xb,
        p["g1"], p["be1"],
        p["wqkv_t"], p["bqkv"],
        p["wo_t"], p["bo"],
        p["g2"], p["be2"],
        p["w1_t"], p["b1"],
        p["w2_t"], p["b2"],
    )
    return jnp.transpose(out, (1, 0, 2))        # back to (S, B, D)


def _reference(src, params, *, nhead):
    """Pure-JAX reference implementing the module's math with the same precision policy
    as the kernel (bf16 matmul operands, f32 accumulation; LN/softmax in f32)."""
    S, B, D = src.shape
    hd = D // nhead
    scale = 1.0 / float(hd) ** 0.5

    def ln(x, g, b):
        m = jnp.mean(x, axis=-1, keepdims=True)
        v = jnp.mean((x - m) ** 2, axis=-1, keepdims=True)
        return (x - m) * jax.lax.rsqrt(v + EPS) * g + b

    def mm(a, w):
        return jnp.dot(a.astype(jnp.bfloat16), w.astype(jnp.bfloat16),
                       preferred_element_type=jnp.float32)

    x = jnp.transpose(src, (1, 0, 2))           # (B, S, D)
    xn = ln(x, params["g1"][0], params["be1"][0])
    qkv = mm(xn, params["wqkv_t"]) + params["bqkv"][0]
    q = qkv[..., :D] * scale
    k = qkv[..., D:2 * D]
    v = qkv[..., 2 * D:]
    qh = q.reshape(B, S, nhead, hd).transpose(0, 2, 1, 3)
    kh = k.reshape(B, S, nhead, hd).transpose(0, 2, 1, 3)
    vh = v.reshape(B, S, nhead, hd).transpose(0, 2, 1, 3)
    sc = jnp.einsum("bhqe,bhke->bhqk", qh.astype(jnp.bfloat16), kh.astype(jnp.bfloat16),
                    preferred_element_type=jnp.float32)
    p = jax.nn.softmax(sc, axis=-1)
    ctx = jnp.einsum("bhqk,bhke->bhqe", p.astype(jnp.bfloat16), vh.astype(jnp.bfloat16),
                     preferred_element_type=jnp.float32)
    ctx = ctx.transpose(0, 2, 1, 3).reshape(B, S, D)
    attn = mm(ctx, params["wo_t"]) + params["bo"][0]
    x1 = xn + attn                              # residual on the normalized src
    yn = ln(x1, params["g2"][0], params["be2"][0])
    h1 = jnp.maximum(mm(yn, params["w1_t"]) + params["b1"][0], 0.0)
    ff = mm(h1, params["w2_t"]) + params["b2"][0]
    out = yn + ff                               # module: second residual on LN2 output
    return jnp.transpose(out, (1, 0, 2))


def make_params(key, d_model, nhead, dim_feedforward):
    ks = jax.random.split(key, 14)
    s = 0.1
    bf16 = lambda w: w.astype(jnp.bfloat16)     # pre-cast ONCE at param build, not per call
    # nn.MultiheadAttention: in_proj_weight (3D, D) = [Wq; Wk; Wv] -> transposed (D, 3D).
    wq = s * jax.random.normal(ks[0], (d_model, d_model), jnp.float32)
    wk = s * jax.random.normal(ks[1], (d_model, d_model), jnp.float32)
    wv = s * jax.random.normal(ks[2], (d_model, d_model), jnp.float32)
    wo = s * jax.random.normal(ks[3], (d_model, d_model), jnp.float32)
    w1 = s * jax.random.normal(ks[4], (dim_feedforward, d_model), jnp.float32)
    w2 = s * jax.random.normal(ks[5], (d_model, dim_feedforward), jnp.float32)
    bq = s * jax.random.normal(ks[6], (1, d_model), jnp.float32)
    bk = s * jax.random.normal(ks[7], (1, d_model), jnp.float32)
    bv = s * jax.random.normal(ks[8], (1, d_model), jnp.float32)
    return {
        "g1": 1.0 + s * jax.random.normal(ks[12], (1, d_model), jnp.float32),
        "be1": s * jax.random.normal(ks[13], (1, d_model), jnp.float32),
        "wqkv_t": bf16(jnp.concatenate([wq.T, wk.T, wv.T], axis=1)),   # (D, 3D) bf16
        "bqkv": jnp.concatenate([bq, bk, bv], axis=1),                 # (1, 3D) f32
        "wo_t": bf16(wo.T),
        "bo": s * jax.random.normal(ks[9], (1, d_model), jnp.float32),
        "g2": jnp.ones((1, d_model), jnp.float32),
        "be2": jnp.zeros((1, d_model), jnp.float32),
        "w1_t": bf16(w1.T),
        "b1": s * jax.random.normal(ks[10], (1, dim_feedforward), jnp.float32),
        "w2_t": bf16(w2.T),
        "b2": s * jax.random.normal(ks[11], (1, d_model), jnp.float32),
    }


if __name__ == "__main__":
    d_model, nhead, dim_feedforward = 32, 4, 64
    seq_len, batch = 8, 2

    key = jax.random.PRNGKey(0)
    k_src, k_par = jax.random.split(key)
    src = jax.random.normal(k_src, (seq_len, batch, d_model), jnp.float32)
    params = make_params(k_par, d_model, nhead, dim_feedforward)

    fwd = jax.jit(functools.partial(transformer_encoder_layer_prenorm, nhead=nhead))
    out = jax.block_until_ready(fwd(src, params))

    ref = _reference(src, params, nhead=nhead)
    assert out.shape == (seq_len, batch, d_model)
    # Tolerance covers the approx-reciprocal softmax denominator and MXU-vs-XLA
    # accumulation-order differences on top of matched bf16-operand matmuls.
    assert jnp.allclose(out, ref, rtol=1e-2, atol=1e-2), float(jnp.max(jnp.abs(out - ref)))

    print("KERNEL_OK")
</pallas_src>

<mosaic_0001>
module attributes {stable_mosaic.version = 11 : i64} {
  func.func @_encoder_layer_kernel(%arg0: i32, %arg1: memref<1x8x32xf32, #tpu.memory_space<vmem>>, %arg2: memref<1x32xf32, #tpu.memory_space<vmem>>, %arg3: memref<1x32xf32, #tpu.memory_space<vmem>>, %arg4: memref<32x96xbf16, #tpu.memory_space<vmem>>, %arg5: memref<1x96xf32, #tpu.memory_space<vmem>>, %arg6: memref<32x32xbf16, #tpu.memory_space<vmem>>, %arg7: memref<1x32xf32, #tpu.memory_space<vmem>>, %arg8: memref<1x32xf32, #tpu.memory_space<vmem>>, %arg9: memref<1x32xf32, #tpu.memory_space<vmem>>, %arg10: memref<32x64xbf16, #tpu.memory_space<vmem>>, %arg11: memref<1x64xf32, #tpu.memory_space<vmem>>, %arg12: memref<64x32xbf16, #tpu.memory_space<vmem>>, %arg13: memref<1x32xf32, #tpu.memory_space<vmem>>, %arg14: memref<1x8x32xf32, #tpu.memory_space<vmem>>) attributes {dimension_semantics = [#tpu.dimension_semantics<parallel>], iteration_bounds = array<i64: 2>, scalar_prefetch = 0 : i64, scratch_operands = 0 : i64, tpu.core_type = #tpu.core_type<tc>, window_params = [{transform_indices = @transform_0, window_bounds = array<i64: 1, 8, 32>}, {pipeline_mode = #tpu.pipeline_mode<synchronous>, transform_indices = @transform_1, window_bounds = array<i64: 1, 32>}, {pipeline_mode = #tpu.pipeline_mode<synchronous>, transform_indices = @transform_2, window_bounds = array<i64: 1, 32>}, {pipeline_mode = #tpu.pipeline_mode<synchronous>, transform_indices = @transform_3, window_bounds = array<i64: 32, 96>}, {pipeline_mode = #tpu.pipeline_mode<synchronous>, transform_indices = @transform_4, window_bounds = array<i64: 1, 96>}, {pipeline_mode = #tpu.pipeline_mode<synchronous>, transform_indices = @transform_5, window_bounds = array<i64: 32, 32>}, {pipeline_mode = #tpu.pipeline_mode<synchronous>, transform_indices = @transform_6, window_bounds = array<i64: 1, 32>}, {pipeline_mode = #tpu.pipeline_mode<synchronous>, transform_indices = @transform_7, window_bounds = array<i64: 1, 32>}, {pipeline_mode = #tpu.pipeline_mode<synchronous>, transform_indices = @transform_8, window_bounds = array<i64: 1, 32>}, {pipeline_mode = #tpu.pipeline_mode<synchronous>, transform_indices = @transform_9, window_bounds = array<i64: 32, 64>}, {pipeline_mode = #tpu.pipeline_mode<synchronous>, transform_indices = @transform_10, window_bounds = array<i64: 1, 64>}, {pipeline_mode = #tpu.pipeline_mode<synchronous>, transform_indices = @transform_11, window_bounds = array<i64: 64, 32>}, {pipeline_mode = #tpu.pipeline_mode<synchronous>, transform_indices = @transform_12, window_bounds = array<i64: 1, 32>}, {transform_indices = @transform_13, window_bounds = array<i64: 1, 8, 32>}]} {
    %c0 = arith.constant 0 : index
    %c0_0 = arith.constant 0 : index
    %c0_1 = arith.constant 0 : index
    %0 = vector.load %arg1[%c0, %c0_0, %c0_1] : memref<1x8x32xf32, #tpu.memory_space<vmem>>, vector<1x8x32xf32>
    %1 = vector.shape_cast %0 : vector<1x8x32xf32> to vector<8x32xf32>
    %cst = arith.constant dense<0.000000e+00> : vector<8xf32>
    %2 = vector.multi_reduction <add>, %1, %cst [1] : vector<8x32xf32> to vector<8xf32>
    %3 = vector.shape_cast %2 : vector<8xf32> to vector<8x1xf32>
    %cst_2 = arith.constant 3.200000e+01 : f32
    %4 = vector.broadcast %cst_2 : f32 to vector<8x1xf32>
    %5 = arith.divf %3, %4 : vector<8x1xf32>
    %6 = vector.broadcast %5 : vector<8x1xf32> to vector<8x32xf32>
    %7 = arith.subf %1, %6 : vector<8x32xf32>
    %8 = arith.mulf %7, %7 : vector<8x32xf32>
    %cst_3 = arith.constant dense<0.000000e+00> : vector<8xf32>
    %9 = vector.multi_reduction <add>, %8, %cst_3 [1] : vector<8x32xf32> to vector<8xf32>
    %10 = vector.shape_cast %9 : vector<8xf32> to vector<8x1xf32>
    %cst_4 = arith.constant 3.200000e+01 : f32
    %11 = vector.broadcast %cst_4 : f32 to vector<8x1xf32>
    %12 = arith.divf %10, %11 : vector<8x1xf32>
    %13 = vector.broadcast %5 : vector<8x1xf32> to vector<8x32xf32>
    %14 = arith.subf %1, %13 : vector<8x32xf32>
    %cst_5 = arith.constant 9.99999974E-6 : f32
    %15 = vector.broadcast %cst_5 : f32 to vector<8x1xf32>
    %16 = arith.addf %12, %15 : vector<8x1xf32>
    %17 = math.rsqrt %16 : vector<8x1xf32>
    %18 = vector.broadcast %17 : vector<8x1xf32> to vector<8x32xf32>
    %19 = arith.mulf %14, %18 : vector<8x32xf32>
    %c0_6 = arith.constant 0 : index
    %c0_7 = arith.constant 0 : index
    %20 = vector.load %arg2[%c0_6, %c0_7] : memref<1x32xf32, #tpu.memory_space<vmem>>, vector<1x32xf32>
    %21 = vector.shape_cast %20 : vector<1x32xf32> to vector<32xf32>
    %22 = vector.shape_cast %21 : vector<32xf32> to vector<1x32xf32>
    %23 = vector.broadcast %22 : vector<1x32xf32> to vector<8x32xf32>
    %24 = arith.mulf %19, %23 : vector<8x32xf32>
    %c0_8 = arith.constant 0 : index
    %c0_9 = arith.constant 0 : index
    %25 = vector.load %arg3[%c0_8, %c0_9] : memref<1x32xf32, #tpu.memory_space<vmem>>, vector<1x32xf32>
    %26 = vector.shape_cast %25 : vector<1x32xf32> to vector<32xf32>
    %27 = vector.shape_cast %26 : vector<32xf32> to vector<1x32xf32>
    %28 = vector.broadcast %27 : vector<1x32xf32> to vector<8x32xf32>
    %29 = arith.addf %24, %28 : vector<8x32xf32>
    %30 = arith.truncf %29 : vector<8x32xf32> to vector<8x32xbf16>
    %c0_10 = arith.constant 0 : index
    %c0_11 = arith.constant 0 : index
    %31 = vector.load %arg4[%c0_10, %c0_11] : memref<32x96xbf16, #tpu.memory_space<vmem>>, vector<32x96xbf16>
    %cst_12 = arith.constant dense<0.000000e+00> : vector<8x96xf32>
    %32 = tpu.matmul %30, %31, %cst_12 {dimension_numbers = #tpu.dot_dimension_numbers<[1], [0], [0], [1], [0, 0, 1, 1], [], []>} : vector<8x32xbf16>, vector<32x96xbf16>, vector<8x96xf32> -> vector<8x96xf32>
    %c0_13 = arith.constant 0 : index
    %c0_14 = arith.constant 0 : index
    %33 = vector.load %arg5[%c0_13, %c0_14] : memref<1x96xf32, #tpu.memory_space<vmem>>, vector<1x96xf32>
    %34 = vector.shape_cast %33 : vector<1x96xf32> to vector<96xf32>
    %35 = vector.shape_cast %34 : vector<96xf32> to vector<1x96xf32>
    %36 = vector.broadcast %35 : vector<1x96xf32> to vector<8x96xf32>
    %37 = arith.addf %32, %36 : vector<8x96xf32>
    %38 = vector.extract_strided_slice %37 {offsets = [0, 0], sizes = [8, 32], strides = [1, 1]} : vector<8x96xf32> to vector<8x32xf32>
    %cst_15 = arith.constant 0.353553385 : f32
    %39 = vector.broadcast %cst_15 : f32 to vector<8x32xf32>
    %40 = arith.mulf %38, %39 : vector<8x32xf32>
    %41 = arith.truncf %40 : vector<8x32xf32> to vector<8x32xbf16>
    %42 = vector.extract_strided_slice %37 {offsets = [0, 32], sizes = [8, 32], strides = [1, 1]} : vector<8x96xf32> to vector<8x32xf32>
    %43 = arith.truncf %42 : vector<8x32xf32> to vector<8x32xbf16>
    %44 = vector.extract_strided_slice %37 {offsets = [0, 64], sizes = [8, 32], strides = [1, 1]} : vector<8x96xf32> to vector<8x32xf32>
    %45 = arith.truncf %44 : vector<8x32xf32> to vector<8x32xbf16>
    %46 = vector.extract_strided_slice %41 {offsets = [0, 0], sizes = [8, 8], strides = [1, 1]} : vector<8x32xbf16> to vector<8x8xbf16>
    %47 = vector.extract_strided_slice %43 {offsets = [0, 0], sizes = [8, 8], strides = [1, 1]} : vector<8x32xbf16> to vector<8x8xbf16>
    %cst_16 = arith.constant dense<0.000000e+00> : vector<8x8xf32>
    %48 = tpu.matmul %46, %47, %cst_16 {dimension_numbers = #tpu.dot_dimension_numbers<[1], [1], [0], [0], [0, 0, 1, 0], [], []>} : vector<8x8xbf16>, vector<8x8xbf16>, vector<8x8xf32> -> vector<8x8xf32>
    %cst_17 = arith.constant dense<0xFF800000> : vector<8xf32>
    %49 = vector.multi_reduction <maximumf>, %48, %cst_17 [1] : vector<8x8xf32> to vector<8xf32>
    %50 = vector.shape_cast %49 : vector<8xf32> to vector<8x1xf32>
    %51 = vector.broadcast %50 : vector<8x1xf32> to vector<8x8xf32>
    %52 = arith.subf %48, %51 : vector<8x8xf32>
    %53 = math.exp %52 : vector<8x8xf32>
    %cst_18 = arith.constant dense<0.000000e+00> : vector<8xf32>
    %54 = vector.multi_reduction <add>, %53, %cst_18 [1] : vector<8x8xf32> to vector<8xf32>
    %55 = vector.shape_cast %54 : vector<8xf32> to vector<8x1xf32>
    %56 = tpu.reciprocal %55 {approx = true} : vector<8x1xf32> -> vector<8x1xf32>
    %57 = vector.broadcast %56 : vector<8x1xf32> to vector<8x8xf32>
    %58 = arith.mulf %53, %57 : vector<8x8xf32>
    %59 = arith.truncf %58 : vector<8x8xf32> to vector<8x8xbf16>
    %60 = vector.extract_strided_slice %45 {offsets = [0, 0], sizes = [8, 8], strides = [1, 1]} : vector<8x32xbf16> to vector<8x8xbf16>
    %cst_19 = arith.constant dense<0.000000e+00> : vector<8x8xf32>
    %61 = tpu.matmul %59, %60, %cst_19 {dimension_numbers = #tpu.dot_dimension_numbers<[1], [0], [0], [1], [0, 0, 1, 1], [], []>} : vector<8x8xbf16>, vector<8x8xbf16>, vector<8x8xf32> -> vector<8x8xf32>
    %62 = vector.extract_strided_slice %41 {offsets = [0, 8], sizes = [8, 8], strides = [1, 1]} : vector<8x32xbf16> to vector<8x8xbf16>
    %63 = vector.extract_strided_slice %43 {offsets = [0, 8], sizes = [8, 8], strides = [1, 1]} : vector<8x32xbf16> to vector<8x8xbf16>
    %cst_20 = arith.constant dense<0.000000e+00> : vector<8x8xf32>
    %64 = tpu.matmul %62, %63, %cst_20 {dimension_numbers = #tpu.dot_dimension_numbers<[1], [1], [0], [0], [0, 0, 1, 0], [], []>} : vector<8x8xbf16>, vector<8x8xbf16>, vector<8x8xf32> -> vector<8x8xf32>
    %cst_21 = arith.constant dense<0xFF800000> : vector<8xf32>
    %65 = vector.multi_reduction <maximumf>, %64, %cst_21 [1] : vector<8x8xf32> to vector<8xf32>
    %66 = vector.shape_cast %65 : vector<8xf32> to vector<8x1xf32>
    %67 = vector.broadcast %66 : vector<8x1xf32> to vector<8x8xf32>
    %68 = arith.subf %64, %67 : vector<8x8xf32>
    %69 = math.exp %68 : vector<8x8xf32>
    %cst_22 = arith.constant dense<0.000000e+00> : vector<8xf32>
    %70 = vector.multi_reduction <add>, %69, %cst_22 [1] : vector<8x8xf32> to vector<8xf32>
    %71 = vector.shape_cast %70 : vector<8xf32> to vector<8x1xf32>
    %72 = tpu.reciprocal %71 {approx = true} : vector<8x1xf32> -> vector<8x1xf32>
    %73 = vector.broadcast %72 : vector<8x1xf32> to vector<8x8xf32>
    %74 = arith.mulf %69, %73 : vector<8x8xf32>
    %75 = arith.truncf %74 : vector<8x8xf32> to vector<8x8xbf16>
    %76 = vector.extract_strided_slice %45 {offsets = [0, 8], sizes = [8, 8], strides = [1, 1]} : vector<8x32xbf16> to vector<8x8xbf16>
    %cst_23 = arith.constant dense<0.000000e+00> : vector<8x8xf32>
    %77 = tpu.matmul %75, %76, %cst_23 {dimension_numbers = #tpu.dot_dimension_numbers<[1], [0], [0], [1], [0, 0, 1, 1], [], []>} : vector<8x8xbf16>, vector<8x8xbf16>, vector<8x8xf32> -> vector<8x8xf32>
    %78 = vector.extract_strided_slice %41 {offsets = [0, 16], sizes = [8, 8], strides = [1, 1]} : vector<8x32xbf16> to vector<8x8xbf16>
    %79 = vector.extract_strided_slice %43 {offsets = [0, 16], sizes = [8, 8], strides = [1, 1]} : vector<8x32xbf16> to vector<8x8xbf16>
    %cst_24 = arith.constant dense<0.000000e+00> : vector<8x8xf32>
    %80 = tpu.matmul %78, %79, %cst_24 {dimension_numbers = #tpu.dot_dimension_numbers<[1], [1], [0], [0], [0, 0, 1, 0], [], []>} : vector<8x8xbf16>, vector<8x8xbf16>, vector<8x8xf32> -> vector<8x8xf32>
    %cst_25 = arith.constant dense<0xFF800000> : vector<8xf32>
    %81 = vector.multi_reduction <maximumf>, %80, %cst_25 [1] : vector<8x8xf32> to vector<8xf32>
    %82 = vector.shape_cast %81 : vector<8xf32> to vector<8x1xf32>
    %83 = vector.broadcast %82 : vector<8x1xf32> to vector<8x8xf32>
    %84 = arith.subf %80, %83 : vector<8x8xf32>
    %85 = math.exp %84 : vector<8x8xf32>
    %cst_26 = arith.constant dense<0.000000e+00> : vector<8xf32>
    %86 = vector.multi_reduction <add>, %85, %cst_26 [1] : vector<8x8xf32> to vector<8xf32>
    %87 = vector.shape_cast %86 : vector<8xf32> to vector<8x1xf32>
    %88 = tpu.reciprocal %87 {approx = true} : vector<8x1xf32> -> vector<8x1xf32>
    %89 = vector.broadcast %88 : vector<8x1xf32> to vector<8x8xf32>
    %90 = arith.mulf %85, %89 : vector<8x8xf32>
    %91 = arith.truncf %90 : vector<8x8xf32> to vector<8x8xbf16>
    %92 = vector.extract_strided_slice %45 {offsets = [0, 16], sizes = [8, 8], strides = [1, 1]} : vector<8x32xbf16> to vector<8x8xbf16>
    %cst_27 = arith.constant dense<0.000000e+00> : vector<8x8xf32>
    %93 = tpu.matmul %91, %92, %cst_27 {dimension_numbers = #tpu.dot_dimension_numbers<[1], [0], [0], [1], [0, 0, 1, 1], [], []>} : vector<8x8xbf16>, vector<8x8xbf16>, vector<8x8xf32> -> vector<8x8xf32>
    %94 = vector.extract_strided_slice %41 {offsets = [0, 24], sizes = [8, 8], strides = [1, 1]} : vector<8x32xbf16> to vector<8x8xbf16>
    %95 = vector.extract_strided_slice %43 {offsets = [0, 24], sizes = [8, 8], strides = [1, 1]} : vector<8x32xbf16> to vector<8x8xbf16>
    %cst_28 = arith.constant dense<0.000000e+00> : vector<8x8xf32>
    %96 = tpu.matmul %94, %95, %cst_28 {dimension_numbers = #tpu.dot_dimension_numbers<[1], [1], [0], [0], [0, 0, 1, 0], [], []>} : vector<8x8xbf16>, vector<8x8xbf16>, vector<8x8xf32> -> vector<8x8xf32>
    %cst_29 = arith.constant dense<0xFF800000> : vector<8xf32>
    %97 = vector.multi_reduction <maximumf>, %96, %cst_29 [1] : vector<8x8xf32> to vector<8xf32>
    %98 = vector.shape_cast %97 : vector<8xf32> to vector<8x1xf32>
    %99 = vector.broadcast %98 : vector<8x1xf32> to vector<8x8xf32>
    %100 = arith.subf %96, %99 : vector<8x8xf32>
    %101 = math.exp %100 : vector<8x8xf32>
    %cst_30 = arith.constant dense<0.000000e+00> : vector<8xf32>
    %102 = vector.multi_reduction <add>, %101, %cst_30 [1] : vector<8x8xf32> to vector<8xf32>
    %103 = vector.shape_cast %102 : vector<8xf32> to vector<8x1xf32>
    %104 = tpu.reciprocal %103 {approx = true} : vector<8x1xf32> -> vector<8x1xf32>
    %105 = vector.broadcast %104 : vector<8x1xf32> to vector<8x8xf32>
    %106 = arith.mulf %101, %105 : vector<8x8xf32>
    %107 = arith.truncf %106 : vector<8x8xf32> to vector<8x8xbf16>
    %108 = vector.extract_strided_slice %45 {offsets = [0, 24], sizes = [8, 8], strides = [1, 1]} : vector<8x32xbf16> to vector<8x8xbf16>
    %cst_31 = arith.constant dense<0.000000e+00> : vector<8x8xf32>
    %109 = tpu.matmul %107, %108, %cst_31 {dimension_numbers = #tpu.dot_dimension_numbers<[1], [0], [0], [1], [0, 0, 1, 1], [], []>} : vector<8x8xbf16>, vector<8x8xbf16>, vector<8x8xf32> -> vector<8x8xf32>
    %110 = tpu.concatenate %61, %77, %93, %109 in 1 : vector<8x8xf32>, vector<8x8xf32>, vector<8x8xf32>, vector<8x8xf32> -> vector<8x32xf32>
    %111 = arith.truncf %110 : vector<8x32xf32> to vector<8x32xbf16>
    %c0_32 = arith.constant 0 : index
    %c0_33 = arith.constant 0 : index
    %112 = vector.load %arg6[%c0_32, %c0_33] : memref<32x32xbf16, #tpu.memory_space<vmem>>, vector<32x32xbf16>
    %cst_34 = arith.constant dense<0.000000e+00> : vector<8x32xf32>
    %113 = tpu.matmul %111, %112, %cst_34 {dimension_numbers = #tpu.dot_dimension_numbers<[1], [0], [0], [1], [0, 0, 1, 1], [], []>} : vector<8x32xbf16>, vector<32x32xbf16>, vector<8x32xf32> -> vector<8x32xf32>
    %c0_35 = arith.constant 0 : index
    %c0_36 = arith.constant 0 : index
    %114 = vector.load %arg7[%c0_35, %c0_36] : memref<1x32xf32, #tpu.memory_space<vmem>>, vector<1x32xf32>
    %115 = vector.shape_cast %114 : vector<1x32xf32> to vector<32xf32>
    %116 = vector.shape_cast %115 : vector<32xf32> to vector<1x32xf32>
    %117 = vector.broadcast %116 : vector<1x32xf32> to vector<8x32xf32>
    %118 = arith.addf %113, %117 : vector<8x32xf32>
    %119 = arith.addf %29, %118 : vector<8x32xf32>
    %cst_37 = arith.constant dense<0.000000e+00> : vector<8xf32>
    %120 = vector.multi_reduction <add>, %119, %cst_37 [1] : vector<8x32xf32> to vector<8xf32>
    %121 = vector.shape_cast %120 : vector<8xf32> to vector<8x1xf32>
    %cst_38 = arith.constant 3.200000e+01 : f32
    %122 = vector.broadcast %cst_38 : f32 to vector<8x1xf32>
    %123 = arith.divf %121, %122 : vector<8x1xf32>
    %124 = vector.broadcast %123 : vector<8x1xf32> to vector<8x32xf32>
    %125 = arith.subf %119, %124 : vector<8x32xf32>
    %126 = arith.mulf %125, %125 : vector<8x32xf32>
    %cst_39 = arith.constant dense<0.000000e+00> : vector<8xf32>
    %127 = vector.multi_reduction <add>, %126, %cst_39 [1] : vector<8x32xf32> to vector<8xf32>
    %128 = vector.shape_cast %127 : vector<8xf32> to vector<8x1xf32>
    %cst_40 = arith.constant 3.200000e+01 : f32
    %129 = vector.broadcast %cst_40 : f32 to vector<8x1xf32>
    %130 = arith.divf %128, %129 : vector<8x1xf32>
    %131 = vector.broadcast %123 : vector<8x1xf32> to vector<8x32xf32>
    %132 = arith.subf %119, %131 : vector<8x32xf32>
    %cst_41 = arith.constant 9.99999974E-6 : f32
    %133 = vector.broadcast %cst_41 : f32 to vector<8x1xf32>
    %134 = arith.addf %130, %133 : vector<8x1xf32>
    %135 = math.rsqrt %134 : vector<8x1xf32>
    %136 = vector.broadcast %135 : vector<8x1xf32> to vector<8x32xf32>
    %137 = arith.mulf %132, %136 : vector<8x32xf32>
    %c0_42 = arith.constant 0 : index
    %c0_43 = arith.constant 0 : index
    %138 = vector.load %arg8[%c0_42, %c0_43] : memref<1x32xf32, #tpu.memory_space<vmem>>, vector<1x32xf32>
    %139 = vector.shape_cast %138 : vector<1x32xf32> to vector<32xf32>
    %140 = vector.shape_cast %139 : vector<32xf32> to vector<1x32xf32>
    %141 = vector.broadcast %140 : vector<1x32xf32> to vector<8x32xf32>
    %142 = arith.mulf %137, %141 : vector<8x32xf32>
    %c0_44 = arith.constant 0 : index
    %c0_45 = arith.constant 0 : index
    %143 = vector.load %arg9[%c0_44, %c0_45] : memref<1x32xf32, #tpu.memory_space<vmem>>, vector<1x32xf32>
    %144 = vector.shape_cast %143 : vector<1x32xf32> to vector<32xf32>
    %145 = vector.shape_cast %144 : vector<32xf32> to vector<1x32xf32>
    %146 = vector.broadcast %145 : vector<1x32xf32> to vector<8x32xf32>
    %147 = arith.addf %142, %146 : vector<8x32xf32>
    %148 = arith.truncf %147 : vector<8x32xf32> to vector<8x32xbf16>
    %c0_46 = arith.constant 0 : index
    %c0_47 = arith.constant 0 : index
    %149 = vector.load %arg10[%c0_46, %c0_47] : memref<32x64xbf16, #tpu.memory_space<vmem>>, vector<32x64xbf16>
    %cst_48 = arith.constant dense<0.000000e+00> : vector<8x64xf32>
    %150 = tpu.matmul %148, %149, %cst_48 {dimension_numbers = #tpu.dot_dimension_numbers<[1], [0], [0], [1], [0, 0, 1, 1], [], []>} : vector<8x32xbf16>, vector<32x64xbf16>, vector<8x64xf32> -> vector<8x64xf32>
    %c0_49 = arith.constant 0 : index
    %c0_50 = arith.constant 0 : index
    %151 = vector.load %arg11[%c0_49, %c0_50] : memref<1x64xf32, #tpu.memory_space<vmem>>, vector<1x64xf32>
    %152 = vector.shape_cast %151 : vector<1x64xf32> to vector<64xf32>
    %153 = vector.shape_cast %152 : vector<64xf32> to vector<1x64xf32>
    %154 = vector.broadcast %153 : vector<1x64xf32> to vector<8x64xf32>
    %155 = arith.addf %150, %154 : vector<8x64xf32>
    %cst_51 = arith.constant 0.000000e+00 : f32
    %156 = vector.broadcast %cst_51 : f32 to vector<8x64xf32>
    %157 = arith.maximumf %155, %156 : vector<8x64xf32>
    %158 = arith.truncf %157 : vector<8x64xf32> to vector<8x64xbf16>
    %c0_52 = arith.constant 0 : index
    %c0_53 = arith.constant 0 : index
    %159 = vector.load %arg12[%c0_52, %c0_53] : memref<64x32xbf16, #tpu.memory_space<vmem>>, vector<64x32xbf16>
    %cst_54 = arith.constant dense<0.000000e+00> : vector<8x32xf32>
    %160 = tpu.matmul %158, %159, %cst_54 {dimension_numbers = #tpu.dot_dimension_numbers<[1], [0], [0], [1], [0, 0, 1, 1], [], []>} : vector<8x64xbf16>, vector<64x32xbf16>, vector<8x32xf32> -> vector<8x32xf32>
    %c0_55 = arith.constant 0 : index
    %c0_56 = arith.constant 0 : index
    %161 = vector.load %arg13[%c0_55, %c0_56] : memref<1x32xf32, #tpu.memory_space<vmem>>, vector<1x32xf32>
    %162 = vector.shape_cast %161 : vector<1x32xf32> to vector<32xf32>
    %163 = vector.shape_cast %162 : vector<32xf32> to vector<1x32xf32>
    %164 = vector.broadcast %163 : vector<1x32xf32> to vector<8x32xf32>
    %165 = arith.addf %160, %164 : vector<8x32xf32>
    %166 = arith.addf %147, %165 : vector<8x32xf32>
    %c0_57 = arith.constant 0 : index
    %c0_58 = arith.constant 0 : index
    %c0_59 = arith.constant 0 : index
    %167 = vector.load %arg14[%c0_57, %c0_58, %c0_59] : memref<1x8x32xf32, #tpu.memory_space<vmem>>, vector<1x8x32xf32>
    %168 = vector.shape_cast %167 : vector<1x8x32xf32> to vector<8x32xf32>
    %169 = vector.shape_cast %166 : vector<8x32xf32> to vector<1x8x32xf32>
    tpu.vector_store %arg14[%c0_57, %c0_58, %c0_59], %169 {strides = array<i32>} : memref<1x8x32xf32, #tpu.memory_space<vmem>>, vector<1x8x32xf32>,
    return
  }
  func.func @transform_0(%arg0: i32) -> (i32, i32, i32) {
    %c0_i32 = arith.constant 0 : i32
    %c0_i32_0 = arith.constant 0 : i32
    %c0_i32_1 = arith.constant 0 : i32
    return %arg0, %c0_i32, %c0_i32_0 : i32, i32, i32
  }
  func.func @transform_1(%arg0: i32) -> (i32, i32) {
    %c0_i32 = arith.constant 0 : i32
    %c0_i32_0 = arith.constant 0 : i32
    %c0_i32_1 = arith.constant 0 : i32
    return %c0_i32, %c0_i32_0 : i32, i32
  }
  func.func @transform_2(%arg0: i32) -> (i32, i32) {
    %c0_i32 = arith.constant 0 : i32
    %c0_i32_0 = arith.constant 0 : i32
    %c0_i32_1 = arith.constant 0 : i32
    return %c0_i32, %c0_i32_0 : i32, i32
  }
  func.func @transform_3(%arg0: i32) -> (i32, i32) {
    %c0_i32 = arith.constant 0 : i32
    %c0_i32_0 = arith.constant 0 : i32
    %c0_i32_1 = arith.constant 0 : i32
    return %c0_i32, %c0_i32_0 : i32, i32
  }
  func.func @transform_4(%arg0: i32) -> (i32, i32) {
    %c0_i32 = arith.constant 0 : i32
    %c0_i32_0 = arith.constant 0 : i32
    %c0_i32_1 = arith.constant 0 : i32
    return %c0_i32, %c0_i32_0 : i32, i32
  }
  func.func @transform_5(%arg0: i32) -> (i32, i32) {
    %c0_i32 = arith.constant 0 : i32
    %c0_i32_0 = arith.constant 0 : i32
    %c0_i32_1 = arith.constant 0 : i32
    return %c0_i32, %c0_i32_0 : i32, i32
  }
  func.func @transform_6(%arg0: i32) -> (i32, i32) {
    %c0_i32 = arith.constant 0 : i32
    %c0_i32_0 = arith.constant 0 : i32
    %c0_i32_1 = arith.constant 0 : i32
    return %c0_i32, %c0_i32_0 : i32, i32
  }
  func.func @transform_7(%arg0: i32) -> (i32, i32) {
    %c0_i32 = arith.constant 0 : i32
    %c0_i32_0 = arith.constant 0 : i32
    %c0_i32_1 = arith.constant 0 : i32
    return %c0_i32, %c0_i32_0 : i32, i32
  }
  func.func @transform_8(%arg0: i32) -> (i32, i32) {
    %c0_i32 = arith.constant 0 : i32
    %c0_i32_0 = arith.constant 0 : i32
    %c0_i32_1 = arith.constant 0 : i32
    return %c0_i32, %c0_i32_0 : i32, i32
  }
  func.func @transform_9(%arg0: i32) -> (i32, i32) {
    %c0_i32 = arith.constant 0 : i32
    %c0_i32_0 = arith.constant 0 : i32
    %c0_i32_1 = arith.constant 0 : i32
    return %c0_i32, %c0_i32_0 : i32, i32
  }
  func.func @transform_10(%arg0: i32) -> (i32, i32) {
    %c0_i32 = arith.constant 0 : i32
    %c0_i32_0 = arith.constant 0 : i32
    %c0_i32_1 = arith.constant 0 : i32
    return %c0_i32, %c0_i32_0 : i32, i32
  }
  func.func @transform_11(%arg0: i32) -> (i32, i32) {
    %c0_i32 = arith.constant 0 : i32
    %c0_i32_0 = arith.constant 0 : i32
    %c0_i32_1 = arith.constant 0 : i32
    return %c0_i32, %c0_i32_0 : i32, i32
  }
  func.func @transform_12(%arg0: i32) -> (i32, i32) {
    %c0_i32 = arith.constant 0 : i32
    %c0_i32_0 = arith.constant 0 : i32
    %c0_i32_1 = arith.constant 0 : i32
    return %c0_i32, %c0_i32_0 : i32, i32
  }
  func.func @transform_13(%arg0: i32) -> (i32, i32, i32) {
    %c0_i32 = arith.constant 0 : i32
    %c0_i32_0 = arith.constant 0 : i32
    %c0_i32_1 = arith.constant 0 : i32
    return %arg0, %c0_i32, %c0_i32_0 : i32, i32, i32
  }
}

</mosaic_0001>

<bundles_post_ra>
// kernel: transformer_encoder_layer_prenorm.1
= control target key start
LH: loop header
LB: loop body
LE: loop exit
PB: predicated region body
PF: predicated region fallthrough
CT: control target
= control target key end

     0   :  { %s1603_s25 = smov 0   ;;  %s1771_s0 = inlined_call_operand.vmem [shape: f32[2,8,32], index: 0, kind: input, shape index: {}]   ;;  %s1772_s1 = inlined_call_operand.vmem [shape: f32[1,32], index: 1, kind: input, shape index: {}]   ;;  %s1773_s2 = inlined_call_operand.vmem [shape: f32[1,32], index: 2, kind: input, shape index: {}]   ;;  %s1774_s3 = inlined_call_operand.vmem [shape: bf16[32,96], index: 3, kind: input, shape index: {}]   ;;  %s1775_s4 = inlined_call_operand.vmem [shape: f32[1,96], index: 4, kind: input, shape index: {}]   ;;  %s1776_s5 = inlined_call_operand.vmem [shape: bf16[32,32], index: 5, kind: input, shape index: {}]   ;;  %s1777_s6 = inlined_call_operand.vmem [shape: f32[1,32], index: 6, kind: input, shape index: {}]   ;;  %s1778_s7 = inlined_call_operand.vmem [shape: f32[1,32], index: 7, kind: input, shape index: {}]   ;;  %s1779_s8 = inlined_call_operand.vmem [shape: f32[1,32], index: 8, kind: input, shape index: {}]   ;;  %s1780_s9 = inlined_call_operand.vmem [shape: bf16[32,64], index: 9, kind: input, shape index: {}]   ;;  %s1781_s10 = inlined_call_operand.vmem [shape: f32[1,64], index: 10, kind: input, shape index: {}]   ;;  %s1782_s11 = inlined_call_operand.vmem [shape: bf16[64,32], index: 11, kind: input, shape index: {}]   ;;  %s1783_s12 = inlined_call_operand.vmem [shape: f32[1,32], index: 12, kind: input, shape index: {}]   ;;  %s1784_s13 = inlined_call_operand.vmem [shape: f32[2,8,32], index: 13, kind: output, shape index: {}]  }
   0x1 LB: > { %s1302_s26 = sadd.s32 4294967295, %s1515_s25   ;;  %p1306_p0 = scmp.ge.s32.totalorder %s1515_s25, 1  ;;  %s1515_s25 = sphi %s1603_s25, %s23_s25  }
   0x2   : > { %p386_p1 = scmp.lt.s32.totalorder %s1515_s25, 3 }
   0x4   : > { %p387_p2 = pnand %p1306_p0, %p386_p1 }
   0x5   : > { %p428_p3 = scmp.lt.s32.totalorder (!%p387_p2), %s1302_s26, 1  ;;  %s1519_s24 = smov (!%p387_p2), 96  }
   0x6   : > { %390 = sbr.rel (%p387_p2) target bundleno = 2429 (0x97d), region = 72  ;;  %s1520_s28 = smov (!%p387_p2), 120  }
   0x7   : > { %s1521_s29 = smov (!%p387_p2), 88   ;;  %s1523_s14 = smov (!%p387_p2), 112  }
   0x8   : > { %s1524_s15 = smov (!%p387_p2), 72   ;;  %s1525_s16 = smov (!%p387_p2), 104  }
   0x9   : > { %s1526_s17 = smov (!%p387_p2), 64   ;;  %s1527_s18 = smov (!%p387_p2), 56  }
   0xa   : > { %s1528_s19 = smov (!%p387_p2), 48   ;;  %s1529_s20 = smov (!%p387_p2), 40  }
   0xb   : > { %s1786_s26 = smov (!%p428_p3, %s1302_s26), 1  ;;  %vm438_vm0 = vcmask 261120   ;;  %v1479_v7 = vld [vmem:[%s1774_s3 + $0x8] sm:$0xff]   ;;  %v1517_v8 = vmov 0.0   ;;  %vm1518_vm1 = vmmov 0   ;;  %v1480_v9 = vld [vmem:[%s1774_s3] sm:$0xff]  }
   0xc   : > { %s1307_s27 = sshll.u32 %s1786_s26, 3  ;;  %1371 = vmatprep.subr.bf16.mxu0 %v1517_v8  ;;  %1375 = vmatprep.mubr.msk.bf16.mxu0 %vm1518_vm1, %v1517_v8  ;;  %v1309_v14 = vld [vmem:[%s1772_s1] ss:$0 sm:$0xff]  ;;  %vm542_vm2 = vcmask 64512   ;;  %vm606_vm3 = vcmask 1043456   ;;  %s1530_s21 = smov 8  }
   0xd   : > { %s431_s30 = scalar_lea.vmem %s1771_s0, %s1307_s27  ;;  %1372 = vmatpush3.bf16.msra.mxu0 %v1479_v7  ;;  %1379 = vmatprep.subr.bf16.mxu1 %v1517_v8  ;;  %v1310_v16 = vld [vmem:[%s1773_s2] ss:$0 sm:$0xff]  ;;  %vm994_vm4 = vcmask 130048   ;;  %vm996_vm5 = vcmask 195584   ;;  %vm1203_vm6 = vcmask 523264  }
   0xe   : > { %v437_v0 = vld [vmem:[%s431_s30] sm:$0xff]  ;;  %1373 = vmatprep.subr.bf16.mxu0 %v1517_v8  ;;  %1381 = vmatprep.mubr.msk.bf16.mxu1 %vm1518_vm1, %v1517_v8  ;;  %s1522_s30 = smov 80  }
   0xf   : > { %v439_v1 = vsel %vm438_vm0, %v437_v0, 0.0  ;;  %v1311_v20 = vld [vmem:[%s1775_s4] ss:$0 sm:$0xff] }
  0x10   : > { %440 = vadd.xlane.f32.xlu0 %v439_v1 }
  0x11   : > { %1374 = vmatpush3.bf16.msra.mxu0 %v1480_v9 }
  0x12   : > { %1385 = vmatprep.subr.bf16.mxu0 %v1517_v8 }
  0x99   : > { %v441_v2 = vpop.xlane.xlu0 %440 }
  0x9a   : > { %v443_v3 = vmul.f32 0.03125, %v441_v2 }
  0x9c   : > { %v444_v4 = vsub.f32 %v437_v0, %v443_v3 }
  0x9e   : > { %v445_v5 = vmul.f32 %v444_v4, %v444_v4 }
  0xa0   : > { %v446_v6 = vsel %vm438_vm0, %v445_v5, 0.0 }
  0xa1   : > { %447 = vadd.xlane.f32.xlu0 %v446_v6 }
 0x12a   : > { %v448_v10 = vpop.xlane.xlu0 %447 }
 0x12b   : > { %v449_v11 = vmul.f32 0.03125, %v448_v10 }
 0x12d   : > { %v450_v12 = vadd.f32 1e-05, %v449_v11 }
 0x12f   : > { %1489 = vrsqrt.f32 %v450_v12 }
 0x13c   : > { %v1490_v13 = vpop.eup %1489 }
 0x13d   : > { %v452_v15 = vmul.f32 %v1490_v13, %v444_v4 }
 0x13f   : > { %v460_v17 = vmul.f32 %v1309_v14, %v452_v15 }
 0x141   : > { %v1641_v18 = vadd.f32 %v1310_v16, %v460_v17 }
 0x143   : > { %v469_v19 = vpack.c.bf16 %v1641_v18, %v1641_v18 }
 0x145   : > { %1376 = vmatmul.mubr.msk.bf16.vlgmr.msra.gmra.mxu0 %vm438_vm0, %v469_v19 }
 0x146   : > { %1387 = vmatprep.mubr.msk.bf16.mxu0 %vm1518_vm1, %v1517_v8 }
 0x205   : > { %v530_v21 = vpop.f32.mrf.mxu0 }
 0x206   : > { %v531_v22 = vadd.f32 %v1311_v20, %v530_v21 }
 0x207   : > { %v1377_v23 = vpop.f32.mrf.mxu0 }
 0x208   : > { %v536_v24 = vmul.f32 0.35355338, %v531_v22  ;;  %v1651_v25 = vpack.c.bf16 %v531_v22, %v531_v22 }
 0x209   : > { %v533_v26 = vpop.f32.mrf.mxu0 }
 0x20a   : > { %v537_v27 = vpack.c.bf16 %v536_v24, %v536_v24  ;;  %540 = vrot.lane.b32.xlu1 %v1651_v25, %s1519_s24  ;;  %s435_s24 = scalar_lea.vmem %s1784_s13, %s1307_s27 }
 0x20b   : > { %v1378_v28 = vpop.f32.mrf.mxu0 }
 0x20c   : > { %651 = vrot.lane.b32.xlu0 %v537_v27, %s1520_s28 }
 0x20e   : > { %653 = vrot.lane.b32.xlu1 %v1651_v25, %s1521_s29  ;;  %s1531_s29 = smov 16  }
 0x212   : > { %763 = vrot.lane.b32.xlu1 %v1651_v25, %s1522_s30  ;;  %s1532_s30 = smov 24  }
 0x216   : > { %761 = vrot.lane.b32.xlu1 %v537_v27, %s1523_s14 }
 0x21a   : > { %873 = vrot.lane.b32.xlu1 %v1651_v25, %s1524_s15 }
 0x21e   : > { %871 = vrot.lane.b32.xlu1 %v537_v27, %s1525_s16 }
 0x27c   : > { %v541_v29 = vpop.permute.xlu1 %540 }
 0x27d   : > { %v547_v30 = vsel %vm542_vm2, %v541_v29, 0 }
 0x27e   : > { %1380 = vmatpush3.bf16.xpose.msra.mxu1 %v547_v30  ;;  %v652_v34 = vpop.permute.xlu0 %651 }
 0x27f   : > { %1391 = vmatprep.subr.bf16.mxu1 %v1517_v8 }
 0x280   : > { %v654_v31 = vpop.permute.xlu1 %653 }
 0x281   : > { %v659_v32 = vsel %vm542_vm2, %v654_v31, 0 }
 0x284   : > { %v764_v33 = vpop.permute.xlu1 %763 }
 0x285   : > { %1382 = vmatmul.mubr.msk.bf16.vlgmr.msra.gmra.mxu1 %vm542_vm2, %v537_v27  ;;  %v769_v36 = vsel %vm542_vm2, %v764_v33, 0 }
 0x286   : > { %1392 = vmatpush3.bf16.xpose.msra.mxu1 %v659_v32  ;;  %1393 = vmatprep.mubr.msk.bf16.mxu1 %vm1518_vm1, %v1517_v8 }
 0x287   : > { %1403 = vmatprep.subr.bf16.mxu1 %v1517_v8 }
 0x288   : > { %v762_v35 = vpop.permute.xlu1 %761 }
 0x28c   : > { %v874_v37 = vpop.permute.xlu1 %873 }
 0x28d   : > { %1394 = vmatmul.mubr.msk.bf16.vlgmr.msra.gmra.mxu1 %vm542_vm2, %v652_v34  ;;  %v879_v38 = vsel %vm542_vm2, %v874_v37, 0 }
 0x28e   : > { %1404 = vmatpush3.bf16.xpose.msra.mxu1 %v769_v36  ;;  %1405 = vmatprep.mubr.msk.bf16.mxu1 %vm1518_vm1, %v1517_v8 }
 0x28f   : > { %1415 = vmatprep.subr.bf16.mxu1 %v1517_v8 }
 0x290   : > { %v872_v39 = vpop.permute.xlu1 %871 }
 0x295   : > { %1406 = vmatmul.mubr.msk.bf16.vlgmr.msra.gmra.mxu1 %vm542_vm2, %v762_v35 }
 0x296   : > { %1416 = vmatpush3.bf16.xpose.msra.mxu1 %v879_v38  ;;  %1417 = vmatprep.mubr.msk.bf16.mxu1 %vm1518_vm1, %v1517_v8 }
 0x297   : > { %1427 = vmatprep.subr.bf16.mxu1 %v1517_v8 }
 0x29d   : > { %1418 = vmatmul.mubr.msk.bf16.vlgmr.msra.gmra.mxu1 %vm542_vm2, %v872_v39 }
 0x29e   : > { %1431 = vmatprep.mubr.msk.bf16.mxu1 %vm1518_vm1, %v1517_v8 }
 0x345   : > { %v583_v40 = vpop.f32.mrf.mxu1 }
 0x346   : > { %v589_v41 = vsel %vm542_vm2, %v583_v40, -inf }
 0x347   : > { %590 = vmax.xlane.f32.xlu1 %v589_v41  ;;  %v1383_v42 = vpop.f32.mrf.mxu1 }
 0x349   : > { %v586_v43 = vpop.f32.mrf.mxu1 }
 0x34b   : > { %v1384_v44 = vpop.f32.mrf.mxu1 }
 0x34d   : > { %v695_v45 = vpop.f32.mrf.mxu1 }
 0x34e   : > { %v701_v46 = vsel %vm542_vm2, %v695_v45, -inf }
 0x34f   : > { %702 = vmax.xlane.f32.xlu0 %v701_v46  ;;  %v1395_v47 = vpop.f32.mrf.mxu1 }
 0x351   : > { %v698_v48 = vpop.f32.mrf.mxu1 }
 0x353   : > { %v1396_v49 = vpop.f32.mrf.mxu1 }
 0x355   : > { %v805_v50 = vpop.f32.mrf.mxu1 }
 0x356   : > { %v811_v51 = vsel %vm542_vm2, %v805_v50, -inf }
 0x357   : > { %812 = vmax.xlane.f32.xlu1 %v811_v51  ;;  %v1407_v52 = vpop.f32.mrf.mxu1  ;;  %v1482_v51 = vld [vmem:[%s1776_s5] sm:$0xff]  }
 0x359   : > { %v808_v53 = vpop.f32.mrf.mxu1 }
 0x35b   : > { %v1408_v54 = vpop.f32.mrf.mxu1 }
 0x35d   : > { %v915_v55 = vpop.f32.mrf.mxu1 }
 0x35e   : > { %v921_v56 = vsel %vm542_vm2, %v915_v55, -inf }
 0x35f   : > { %922 = vmax.xlane.f32.xlu0 %v921_v56  ;;  %v1419_v57 = vpop.f32.mrf.mxu1 }
 0x361   : > { %v918_v58 = vpop.f32.mrf.mxu1 }
 0x363   : > { %v1420_v59 = vpop.f32.mrf.mxu1 }
 0x3d0   : > { %v591_v60 = vpop.xlane.xlu1 %590 }
 0x3d1   : > { %v592_v61 = vsub.f32 %v583_v40, %v591_v60 }
 0x3d3   : > { %v593_v62 = vmul.f32 1.442695, %v592_v61 }
 0x3d5   : > { %1491 = vpow2.f32 %v593_v62 }
 0x3d8   : > { %v703_v63 = vpop.xlane.xlu0 %702 }
 0x3d9   : > { %v704_v0 = vsub.f32 %v695_v45, %v703_v63 }
 0x3db   : > { %v705_v1 = vmul.f32 1.442695, %v704_v0 }
 0x3dd   : > { %1493 = vpow2.f32 %v705_v1 }
 0x3e0   : > { %v813_v12 = vpop.xlane.xlu1 %812 }
 0x3e1   : > { %v814_v13 = vsub.f32 %v805_v50, %v813_v12  ;;  %v1481_v50 = vld [vmem:[%s1776_s5 + $0x8] sm:$0xff]  }
 0x3e2   : > { %v1492_v2 = vpop.eup %1491  ;;  %1428 = vmatpush3.bf16.msra.mxu1 %v1481_v50 }
 0x3e3   : > { %v595_v3 = vsel %vm542_vm2, %v1492_v2, 0.0  ;;  %v815_v14 = vmul.f32 1.442695, %v814_v13  ;;  %1429 = vmatprep.subr.bf16.mxu1 %v1517_v8 }
 0x3e4   : > { %596 = vadd.xlane.f32.xlu1 %v595_v3  ;;  %v1323_v3 = vld [vmem:[%s1777_s6] ss:$0 sm:$0xff] }
 0x3e6   : > { %1430 = vmatpush3.bf16.msra.mxu1 %v1482_v51 }
 0x3e7   : > { %1443 = vmatprep.subr.bf16.mxu1 %v1517_v8 }
 0x3e8   : > { %v923_v4 = vpop.xlane.xlu0 %922 }
 0x3e9   : > { %v924_v5 = vsub.f32 %v915_v55, %v923_v4 }
 0x3ea   : > { %v1494_v6 = vpop.eup %1493 }
 0x3eb   : > { %v925_v7 = vmul.f32 1.442695, %v924_v5  ;;  %v707_v9 = vsel %vm542_vm2, %v1494_v6, 0.0 }
 0x3ec   : > { %708 = vadd.xlane.f32.xlu0 %v707_v9 }
 0x3ed   : > { %1495 = vpow2.f32 %v925_v7 }
 0x3ee   : > { %1497 = vpow2.f32 %v815_v14 }
 0x3f5   : > { %601 = vrot.lane.b32.xlu1 %v1651_v25, %s1526_s17 }
 0x3fa   : > { %v1496_v10 = vpop.eup %1495 }
 0x3fb   : > { %v927_v11 = vsel %vm542_vm2, %v1496_v10, 0.0  ;;  %v1498_v15 = vpop.eup %1497 }
 0x3fc   : > { %928 = vadd.xlane.f32.xlu0 %v927_v11  ;;  %v817_v16 = vsel %vm542_vm2, %v1498_v15, 0.0 }
 0x412   : > { %713 = vrot.lane.b32.xlu0 %v1651_v25, %s1527_s18 }
 0x419   : > { %818 = vadd.xlane.f32.xlu1 %v817_v16 }
 0x42a   : > { %823 = vrot.lane.b32.xlu1 %v1651_v25, %s1528_s19 }
 0x42e   : > { %933 = vrot.lane.b32.xlu1 %v1651_v25, %s1529_s20 }
 0x46d   : > { %v597_v17 = vpop.xlane.xlu1 %596 }
 0x46e   : > { %1499 = vrcp.f32 %v597_v17  ;;  %v1483_v17 = vld [vmem:[%s1780_s9 + $0x8] sm:$0xff]  }
 0x471   : > { %v602_v19 = vpop.permute.xlu1 %601 }
 0x472   : > { %v608_v20 = vsel %vm606_vm3, %v602_v19, 0  ;;  %v1485_v19 = vld [vmem:[%s1782_s11 + $0x18] sm:$0xff]  }
 0x473   : > { %1386 = vmatpush3.bf16.msra.mxu0 %v608_v20  ;;  %v1486_v20 = vld [vmem:[%s1782_s11 + $0x10] sm:$0xff]  }
 0x474   : > { %1397 = vmatprep.subr.bf16.mxu0 %v1517_v8 }
 0x475   : > { %v709_v21 = vpop.xlane.xlu0 %708 }
 0x476   : > { %1501 = vrcp.f32 %v709_v21 }
 0x47b   : > { %v1500_v22 = vpop.eup %1499 }
 0x47c   : > { %v599_v23 = vmul.f32 %v1500_v22, %v1492_v2 }
 0x47e   : > { %v600_v24 = vpack.c.bf16 %v599_v23, %v599_v23 }
 0x480   : > { %1388 = vmatmul.mubr.msk.bf16.vlgmr.msra.gmra.mxu0 %vm542_vm2, %v600_v24 }
 0x481   : > { %1399 = vmatprep.mubr.msk.bf16.mxu0 %vm1518_vm1, %v1517_v8 }
 0x483   : > { %v1502_v25 = vpop.eup %1501 }
 0x484   : > { %v711_v27 = vmul.f32 %v1502_v25, %v1494_v6  ;;  %v1327_v25 = vld [vmem:[%s1778_s7] ss:$0 sm:$0xff] }
 0x485   : > { %v929_v26 = vpop.xlane.xlu0 %928 }
 0x486   : > { %v712_v30 = vpack.c.bf16 %v711_v27, %v711_v27  ;;  %v1328_v27 = vld [vmem:[%s1779_s8] ss:$0 sm:$0xff] }
 0x489   : > { %v714_v28 = vpop.permute.xlu0 %713 }
 0x48a   : > { %v719_v29 = vsel %vm606_vm3, %v714_v28, 0 }
 0x48b   : > { %1398 = vmatpush3.bf16.msra.mxu0 %v719_v29 }
 0x48c   : > { %1409 = vmatprep.subr.bf16.mxu0 %v1517_v8 }
 0x48e   : > { %1400 = vmatmul.mubr.msk.bf16.vlgmr.msra.gmra.mxu0 %vm542_vm2, %v712_v30 }
 0x48f   : > { %1411 = vmatprep.mubr.msk.bf16.mxu0 %vm1518_vm1, %v1517_v8 }
 0x4a2   : > { %v819_v31 = vpop.xlane.xlu1 %818 }
 0x4a3   : > { %1503 = vrcp.f32 %v819_v31  ;;  %v1487_v31 = vld [vmem:[%s1782_s11 + $0x8] sm:$0xff]  }
 0x4a4   : > { %1505 = vrcp.f32 %v929_v26 }
 0x4a6   : > { %v824_v32 = vpop.permute.xlu1 %823 }
 0x4a7   : > { %v829_v33 = vsel %vm606_vm3, %v824_v32, 0  ;;  %v1488_v32 = vld [vmem:[%s1782_s11] sm:$0xff]  }
 0x4a8   : > { %1410 = vmatpush3.bf16.msra.mxu0 %v829_v33  ;;  %v1329_v33 = vld [vmem:[%s1781_s10] ss:$0 sm:$0xff] }
 0x4a9   : > { %1421 = vmatprep.subr.bf16.mxu0 %v1517_v8 }
 0x4aa   : > { %v934_v36 = vpop.permute.xlu1 %933 }
 0x4ab   : > { %v939_v39 = vsel %vm606_vm3, %v934_v36, 0 }
 0x4b0   : > { %v1504_v34 = vpop.eup %1503 }
 0x4b1   : > { %v821_v35 = vmul.f32 %v1504_v34, %v1498_v15  ;;  %v1506_v38 = vpop.eup %1505 }
 0x4b2   : > { %v931_v40 = vmul.f32 %v1506_v38, %v1496_v10 }
 0x4b3   : > { %v822_v37 = vpack.c.bf16 %v821_v35, %v821_v35 }
 0x4b4   : > { %v932_v41 = vpack.c.bf16 %v931_v40, %v931_v40 }
 0x4b5   : > { %1412 = vmatmul.mubr.msk.bf16.vlgmr.msra.gmra.mxu0 %vm542_vm2, %v822_v37 }
 0x4b6   : > { %1422 = vmatpush3.bf16.msra.mxu0 %v939_v39  ;;  %1423 = vmatprep.mubr.msk.bf16.mxu0 %vm1518_vm1, %v1517_v8 }
 0x4b7   : > { %1435 = vmatprep.subr.bf16.mxu0 %v1517_v8 }
 0x4bd   : > { %1424 = vmatmul.mubr.msk.bf16.vlgmr.msra.gmra.mxu0 %vm542_vm2, %v932_v41 }
 0x4be   : > { %1439 = vmatprep.mubr.msk.bf16.mxu0 %vm1518_vm1, %v1517_v8  ;;  %1436 = vmatpush3.bf16.msra.mxu0 %v1483_v17 }
 0x4bf   : > { %1437 = vmatprep.subr.bf16.mxu0 %v1517_v8 }
 0x540   : > { %v644_v42 = vpop.f32.mrf.mxu0 }
 0x542   : > { %v1389_v43 = vpop.f32.mrf.mxu0 }
 0x544   : > { %v647_v44 = vpop.f32.mrf.mxu0 }
 0x546   : > { %v1390_v45 = vpop.f32.mrf.mxu0 }
 0x54e   : > { %v755_v46 = vpop.f32.mrf.mxu0 }
 0x54f   : > { %982 = vrot.lane.b32.xlu0 %v755_v46, %s1530_s21 }
 0x550   : > { %v1401_v47 = vpop.f32.mrf.mxu0 }
 0x552   : > { %v758_v48 = vpop.f32.mrf.mxu0 }
 0x554   : > { %v1402_v49 = vpop.f32.mrf.mxu0 }
 0x575   : > { %v865_v52 = vpop.f32.mrf.mxu0 }
 0x576   : > { %986 = vrot.lane.b32.xlu1 %v865_v52, %s1531_s29 }
 0x577   : > { %v1413_v53 = vpop.f32.mrf.mxu0 }
 0x579   : > { %v868_v54 = vpop.f32.mrf.mxu0 }
 0x57b   : > { %v1414_v55 = vpop.f32.mrf.mxu0 }
 0x57d   : > { %v975_v56 = vpop.f32.mrf.mxu0 }
 0x57e   : > { %990 = vrot.lane.b32.xlu0 %v975_v56, %s1532_s30 }
 0x57f   : > { %v1425_v57 = vpop.f32.mrf.mxu0 }
 0x581   : > { %v978_v58 = vpop.f32.mrf.mxu0 }
 0x583   : > { %v1426_v59 = vpop.f32.mrf.mxu0 }
 0x5c1   : > { %v983_v60 = vpop.permute.xlu0 %982 }
 0x5c2   : > { %v993_v62 = vsel %vm542_vm2, %v644_v42, %v983_v60 }
 0x5e8   : > { %v987_v61 = vpop.permute.xlu1 %986 }
 0x5e9   : > { %v995_v63 = vsel %vm994_vm4, %v993_v62, %v987_v61 }
 0x5f0   : > { %v991_v0 = vpop.permute.xlu0 %990 }
 0x5f1   : > { %v997_v1 = vsel %vm996_vm5, %v995_v63, %v991_v0 }
 0x5f2   : > { %v998_v2 = vpack.c.bf16 %v997_v1, %v997_v1 }
 0x5f4   : > { %1432 = vmatmul.mubr.msk.bf16.vlgmr.msra.gmra.mxu1 %vm438_vm0, %v998_v2 }
 0x5f5   : > { %1451 = vmatprep.mubr.msk.bf16.mxu1 %vm1518_vm1, %v1517_v8  ;;  %1444 = vmatpush3.bf16.msra.mxu1 %v1485_v19 }
 0x5f6   : > { %1445 = vmatprep.subr.bf16.mxu1 %v1517_v8 }
 0x5f9   : > { %1446 = vmatpush3.bf16.msra.mxu1 %v1486_v20 }
 0x5fa   : > { %1447 = vmatprep.subr.bf16.mxu1 %v1517_v8 }
 0x5fd   : > { %1448 = vmatpush3.bf16.msra.mxu1 %v1487_v31 }
 0x5fe   : > { %1449 = vmatprep.subr.bf16.mxu1 %v1517_v8  ;;  %v1333_v8 = vld [vmem:[%s1783_s12] ss:$0 sm:$0xff] }
 0x601   : > { %1450 = vmatpush3.bf16.msra.mxu1 %v1488_v32 }
 0x6b4   : > { %v1059_v4 = vpop.f32.mrf.mxu1 }
 0x6b5   : > { %v1060_v5 = vadd.f32 %v1323_v3, %v1059_v4 }
 0x6b6   : > { %v1433_v6 = vpop.f32.mrf.mxu1 }
 0x6b7   : > { %v1065_v7 = vadd.f32 %v1060_v5, %v1641_v18  ;;  %v1484_v18 = vld [vmem:[%s1780_s9] sm:$0xff]  }
 0x6b8   : > { %v1062_v9 = vpop.f32.mrf.mxu1  ;;  %1438 = vmatpush3.bf16.msra.mxu0 %v1484_v18 }
 0x6b9   : > { %v1066_v10 = vsel %vm438_vm0, %v1065_v7, 0.0 }
 0x6ba   : > { %1067 = vadd.xlane.f32.xlu1 %v1066_v10  ;;  %v1434_v11 = vpop.f32.mrf.mxu1 }
 0x743   : > { %v1068_v12 = vpop.xlane.xlu1 %1067 }
 0x744   : > { %v1069_v13 = vmul.f32 0.03125, %v1068_v12 }
 0x746   : > { %v1070_v14 = vsub.f32 %v1065_v7, %v1069_v13 }
 0x748   : > { %v1071_v15 = vmul.f32 %v1070_v14, %v1070_v14 }
 0x74a   : > { %v1072_v16 = vsel %vm438_vm0, %v1071_v15, 0.0 }
 0x74b   : > { %1073 = vadd.xlane.f32.xlu0 %v1072_v16 }
 0x7d4   : > { %v1074_v21 = vpop.xlane.xlu0 %1073 }
 0x7d5   : > { %v1075_v22 = vmul.f32 0.03125, %v1074_v21 }
 0x7d7   : > { %v1076_v23 = vadd.f32 1e-05, %v1075_v22 }
 0x7d9   : > { %1507 = vrsqrt.f32 %v1076_v23 }
 0x7e6   : > { %v1508_v24 = vpop.eup %1507 }
 0x7e7   : > { %v1078_v26 = vmul.f32 %v1508_v24, %v1070_v14 }
 0x7e9   : > { %v1086_v28 = vmul.f32 %v1327_v25, %v1078_v26 }
 0x7eb   : > { %v1094_v29 = vadd.f32 %v1328_v27, %v1086_v28 }
 0x7ed   : > { %v1095_v30 = vpack.c.bf16 %v1094_v29, %v1094_v29 }
 0x7ef   : > { %1440 = vmatmul.mubr.msk.bf16.vlgmr.msra.gmra.mxu0 %vm438_vm0, %v1095_v30 }
 0x8af   : > { %v1156_v34 = vpop.f32.mrf.mxu0 }
 0x8b0   : > { %v1157_v35 = vadd.f32 %v1329_v33, %v1156_v34 }
 0x8b1   : > { %v1441_v36 = vpop.f32.mrf.mxu0 }
 0x8b2   : > { %v1162_v37 = vmax.f32 %v1157_v35, 0.0 }
 0x8b3   : > { %v1159_v38 = vpop.f32.mrf.mxu0 }
 0x8b4   : > { %v1163_v39 = vpack.c.bf16 %v1162_v37, %v1162_v37 }
 0x8b5   : > { %v1442_v40 = vpop.f32.mrf.mxu0 }
 0x8b6   : > { %1452 = vmatmul.mubr.msk.bf16.vlgmr.msra.gmra.mxu1 %vm1203_vm6, %v1163_v39 }
 0x976   : > { %v1241_v41 = vpop.f32.mrf.mxu1 }
 0x977   : > { %v1242_v42 = vadd.f32 %v1333_v8, %v1241_v41 }
 0x978   : > { %v1453_v43 = vpop.f32.mrf.mxu1 }
 0x979   : > { %v1247_v44 = vadd.f32 %v1242_v42, %v1094_v29 }
 0x97a   : > { %v1244_v45 = vpop.f32.mrf.mxu1 }
 0x97b   : > { %1248 = vst.msk [vmem:[%s435_s24] sm:$0xff] %vm438_vm0, %v1247_v44 }
 0x97c   : > { %v1454_v46 = vpop.f32.mrf.mxu1 }
 0x97d PF: > { %s23_s25 = sadd.s32 1, %s1515_s25  }
 0x97e   : > { %p20_p4 = scmp.ge.s32.totalorder %s23_s25, 4  }
 0x980   :  { %22 = sbr.rel (!%p20_p4) target bundleno = 1 (0x1), region = 102 }

</bundles_post_ra>
